<compile_context>
chip_gen: v5e
topology: v5e:2x2
jax: 0.10.0
libtpu: 0.0.40
codegen_flags: <defaults>
</compile_context>

<pallas_src>
import functools

import numpy as np
import jax
import jax.numpy as jnp
from jax import lax
from jax.experimental import pallas as pl
from jax.experimental.pallas import tpu as pltpu

EPS = 1e-5


def _make_conv3x3_border_mask(H, W, N):
    """0/1 mask (9, N*H*W): mask[kh*3+kw, n*HW + i*W + j] = 1 iff (i+kh-1, j+kw-1) in-image.

    Built on the host with numpy at trace time -> constant input, no runtime div/mod.
    Because every out-of-image neighbour is masked to zero, a circular roll over the
    lane-concatenated batch axis is exactly equivalent to zero padding.
    """
    HW = H * W
    pos = np.arange(HW)
    row, col = pos // W, pos % W
    mask = np.zeros((9, HW), np.float32)
    for kh in range(3):
        for kw in range(3):
            di, dj = kh - 1, kw - 1
            ok = (row + di >= 0) & (row + di < H) & (col + dj >= 0) & (col + dj < W)
            mask[kh * 3 + kw] = ok.astype(np.float32)
    return jnp.asarray(np.tile(mask, (1, N)))  # (9, N*HW)


def bottleneck_kernel(x_ref, g1_ref, b1_ref, w1_ref, g2_ref, b2_ref, w2_ref,
                      mask_ref, o_ref, *, W):
    # x_ref : (N, Cin, HW) f32      g1/b1 : (Cin, 1)       w1 : (Cmid, Cin) f32
    # g2/b2 : (Cmid, 1)             w2    : (Cout, 9*Cmid) bf16
    # mask  : (9, N*HW) in {0,1}    o_ref : (N, Cout, HW)  (new channels only)
    N, Cin, HW = x_ref.shape
    Cmid = w1_ref.shape[0]
    total = N * HW
    inv_cnt = 1.0 / total

    # Lane-concatenate the batch: (Cin, N*HW).  HW is a multiple of 128 -> aligned copies.
    x = x_ref[...]
    xcat = jnp.concatenate([x[n] for n in range(N)], axis=-1)

    # ---- BN1 (training-mode biased batch stats, two-pass, f32) + ReLU ----
    m1 = jnp.sum(xcat, axis=-1, keepdims=True) * inv_cnt            # (Cin, 1)
    v1 = jnp.sum((xcat - m1) ** 2, axis=-1, keepdims=True) * inv_cnt
    s1 = g1_ref[...] * lax.rsqrt(v1 + EPS)
    t1 = b1_ref[...] - m1 * s1
    y1 = jnp.maximum(xcat * s1 + t1, 0.0)                           # (Cin, N*HW)

    # ---- 1x1 conv, batched over N ----
    w1 = w1_ref[...]
    if Cin <= 8:
        # Tiny K: VPU broadcast-FMA accumulation (leave the MXU alone).
        h = w1[:, 0:1] * y1[0:1, :]
        for c in range(1, Cin):
            h = h + w1[:, c:c + 1] * y1[c:c + 1, :]                 # (Cmid, N*HW)
    else:
        # Real DenseNet Cin: single bf16 MXU matmul, f32 accumulation.
        h = jnp.dot(w1.astype(jnp.bfloat16), y1.astype(jnp.bfloat16),
                    preferred_element_type=jnp.float32)

    # ---- BN2 + ReLU (stats in f32, single lane reduction per stat) ----
    m2 = jnp.sum(h, axis=-1, keepdims=True) * inv_cnt               # (Cmid, 1)
    v2 = jnp.sum((h - m2) ** 2, axis=-1, keepdims=True) * inv_cnt
    s2 = g2_ref[...] * lax.rsqrt(v2 + EPS)
    t2 = b2_ref[...] - m2 * s2
    y2 = jnp.maximum(h * s2 + t2, 0.0)                              # (Cmid, N*HW)

    # ---- 3x3 conv: roll+mask im2col -> one (Cout, 9*Cmid) @ (9*Cmid, N*HW) bf16 matmul ----
    mask = mask_ref[...]                                            # (9, N*HW)
    taps = []
    for kh in range(3):
        for kw in range(3):
            t = kh * 3 + kw
            off = (kh - 1) * W + (kw - 1)
            if t == 4:
                # Centre tap: zero shift, all-ones mask -> no roll, no multiply.
                taps.append(y2)
            else:
                rolled = pltpu.roll(y2, (-off) % total, 1)          # rolled[p] = y2[p + off]
                taps.append(rolled * mask[t:t + 1, :])              # zero out-of-image taps
    patches = jnp.concatenate(taps, axis=0)                         # (9*Cmid, N*HW) f32
    conv = jnp.dot(w2_ref[...], patches.astype(jnp.bfloat16),
                   preferred_element_type=jnp.float32)              # (Cout, N*HW)

    # ---- store only the new channels (aligned lane slices; caller concatenates) ----
    for n in range(N):
        o_ref[n] = conv[:, n * HW:(n + 1) * HW].astype(o_ref.dtype)


@jax.jit
def bottleneck_forward(x_nchw, params):
    N, Cin, H, W = x_nchw.shape
    w1 = params["w1"]                          # (Cmid, Cin)   == conv1.weight[:, :, 0, 0]
    w2 = params["w2"]                          # (Cout, Cmid, 3, 3)  torch OIHW
    Cmid, Cout = w1.shape[0], w2.shape[0]
    HW = H * W

    # Free reshape (no transpose): channels on sublanes, spatial (H*W) on lanes.
    x_flat = x_nchw.reshape(N, Cin, HW)

    # One-time parameter prepacking (constant-folded / cached in a real model).
    g1 = params["g1"].reshape(Cin, 1)
    b1 = params["b1"].reshape(Cin, 1)
    g2 = params["g2"].reshape(Cmid, 1)
    b2 = params["b2"].reshape(Cmid, 1)
    # OIHW -> (Cout, kh, kw, ci) flattened tap-major; cast once to bf16 for the MXU.
    w2_mat = jnp.transpose(w2, (0, 2, 3, 1)).reshape(Cout, 9 * Cmid).astype(jnp.bfloat16)
    mask9 = _make_conv3x3_border_mask(H, W, N)

    kernel = functools.partial(bottleneck_kernel, W=W)

    new = pl.pallas_call(
        kernel,
        out_shape=jax.ShapeDtypeStruct((N, Cout, HW), jnp.float32),
        grid=(1,),
        in_specs=[
            pl.BlockSpec((N, Cin, HW), lambda i: (0, 0, 0)),
            pl.BlockSpec((Cin, 1), lambda i: (0, 0)),
            pl.BlockSpec((Cin, 1), lambda i: (0, 0)),
            pl.BlockSpec((Cmid, Cin), lambda i: (0, 0)),
            pl.BlockSpec((Cmid, 1), lambda i: (0, 0)),
            pl.BlockSpec((Cmid, 1), lambda i: (0, 0)),
            pl.BlockSpec((Cout, 9 * Cmid), lambda i: (0, 0)),
            pl.BlockSpec((9, N * HW), lambda i: (0, 0)),
        ],
        out_specs=pl.BlockSpec((N, Cout, HW), lambda i: (0, 0, 0)),
        compiler_params=pltpu.CompilerParams(
            dimension_semantics=("arbitrary",),
            vmem_limit_bytes=32 * 1024 * 1024),
    )(x_flat, g1, b1, w1, g2, b2, w2_mat, mask9)

    # torch.cat((x, out), 1): x is never re-streamed through the kernel; the caller
    # (here: this wrapper; in a real dense block: a preallocated growing buffer)
    # owns the concat.
    return jnp.concatenate([x_nchw, new.reshape(N, Cout, H, W)], axis=1)


def reference_forward(x, params):
    # Pure-JAX f32 reference in NCHW for correctness checking.
    def bn_relu(t, g, b):
        m = jnp.mean(t, axis=(0, 2, 3), keepdims=True)
        v = jnp.mean((t - m) ** 2, axis=(0, 2, 3), keepdims=True)
        g = g.reshape(1, -1, 1, 1)
        b = b.reshape(1, -1, 1, 1)
        return jnp.maximum((t - m) * lax.rsqrt(v + EPS) * g + b, 0.0)

    y1 = bn_relu(x, params["g1"], params["b1"])
    h = jnp.einsum("oc,nchw->nohw", params["w1"], y1)
    y2 = bn_relu(h, params["g2"], params["b2"])
    out = lax.conv_general_dilated(
        y2, params["w2"], window_strides=(1, 1), padding=((1, 1), (1, 1)),
        dimension_numbers=("NCHW", "OIHW", "NCHW"))
    return jnp.concatenate([x, out], axis=1)


if __name__ == "__main__":
    # Bottleneck(nChannels=4, growthRate=4) -> interChannels = 16
    N, C, H, W = 2, 4, 16, 16
    growth = 4
    inter = 4 * growth

    key = jax.random.PRNGKey(0)
    kx, k1, k2, k3, k4, k5, k6 = jax.random.split(key, 7)

    x = jax.random.normal(kx, (N, C, H, W), jnp.float32)

    params = {
        # BatchNorm affine params
        "g1": 1.0 + 0.1 * jax.random.normal(k1, (C,), jnp.float32),
        "b1": 0.1 * jax.random.normal(k2, (C,), jnp.float32),
        "g2": 1.0 + 0.1 * jax.random.normal(k3, (inter,), jnp.float32),
        "b2": 0.1 * jax.random.normal(k4, (inter,), jnp.float32),
        # conv1: torch weight (inter, C, 1, 1) -> stored as (inter, C)
        "w1": 0.2 * jax.random.normal(k5, (inter, C), jnp.float32),
        # conv2: torch weight OIHW (growth, inter, 3, 3)
        "w2": 0.2 * jax.random.normal(k6, (growth, inter, 3, 3), jnp.float32),
    }

    out = jax.block_until_ready(bottleneck_forward(x, params))
    ref = jax.block_until_ready(reference_forward(x, params))

    assert out.shape == (N, C + growth, H, W), out.shape
    max_diff = jnp.max(jnp.abs(out - ref))
    # Tolerance loosened (f32 -> 1e-4 previously) to cover the bf16 cast at the
    # 3x3-conv MXU boundary; BN stats and elementwise math remain f32.
    assert jnp.allclose(out, ref, atol=2e-2, rtol=2e-2), f"max abs diff {max_diff}"
    print("KERNEL_OK")
</pallas_src>

<mosaic_0001>
module attributes {stable_mosaic.version = 11 : i64} {
  func.func @bottleneck_kernel(%arg0: i32, %arg1: memref<2x4x256xf32, #tpu.memory_space<vmem>>, %arg2: memref<4x1xf32, #tpu.memory_space<vmem>>, %arg3: memref<4x1xf32, #tpu.memory_space<vmem>>, %arg4: memref<16x4xf32, #tpu.memory_space<vmem>>, %arg5: memref<16x1xf32, #tpu.memory_space<vmem>>, %arg6: memref<16x1xf32, #tpu.memory_space<vmem>>, %arg7: memref<4x144xbf16, #tpu.memory_space<vmem>>, %arg8: memref<9x512xf32, #tpu.memory_space<vmem>>, %arg9: memref<2x4x256xf32, #tpu.memory_space<vmem>>) attributes {dimension_semantics = [#tpu.dimension_semantics<arbitrary>], iteration_bounds = array<i64: 1>, scalar_prefetch = 0 : i64, scratch_operands = 0 : i64, tpu.core_type = #tpu.core_type<tc>, window_params = [{pipeline_mode = #tpu.pipeline_mode<synchronous>, transform_indices = @transform_0, window_bounds = array<i64: 2, 4, 256>}, {pipeline_mode = #tpu.pipeline_mode<synchronous>, transform_indices = @transform_1, window_bounds = array<i64: 4, 1>}, {pipeline_mode = #tpu.pipeline_mode<synchronous>, transform_indices = @transform_2, window_bounds = array<i64: 4, 1>}, {pipeline_mode = #tpu.pipeline_mode<synchronous>, transform_indices = @transform_3, window_bounds = array<i64: 16, 4>}, {pipeline_mode = #tpu.pipeline_mode<synchronous>, transform_indices = @transform_4, window_bounds = array<i64: 16, 1>}, {pipeline_mode = #tpu.pipeline_mode<synchronous>, transform_indices = @transform_5, window_bounds = array<i64: 16, 1>}, {pipeline_mode = #tpu.pipeline_mode<synchronous>, transform_indices = @transform_6, window_bounds = array<i64: 4, 144>}, {pipeline_mode = #tpu.pipeline_mode<synchronous>, transform_indices = @transform_7, window_bounds = array<i64: 9, 512>}, {pipeline_mode = #tpu.pipeline_mode<synchronous>, transform_indices = @transform_8, window_bounds = array<i64: 2, 4, 256>}]} {
    %c0 = arith.constant 0 : index
    %c0_0 = arith.constant 0 : index
    %c0_1 = arith.constant 0 : index
    %0 = vector.load %arg1[%c0, %c0_0, %c0_1] : memref<2x4x256xf32, #tpu.memory_space<vmem>>, vector<2x4x256xf32>
    %1 = vector.extract_strided_slice %0 {offsets = [0, 0, 0], sizes = [1, 4, 256], strides = [1, 1, 1]} : vector<2x4x256xf32> to vector<1x4x256xf32>
    %2 = vector.shape_cast %1 : vector<1x4x256xf32> to vector<4x256xf32>
    %3 = vector.extract_strided_slice %0 {offsets = [1, 0, 0], sizes = [1, 4, 256], strides = [1, 1, 1]} : vector<2x4x256xf32> to vector<1x4x256xf32>
    %4 = vector.shape_cast %3 : vector<1x4x256xf32> to vector<4x256xf32>
    %5 = tpu.concatenate %2, %4 in 1 : vector<4x256xf32>, vector<4x256xf32> -> vector<4x512xf32>
    %cst = arith.constant dense<0.000000e+00> : vector<4xf32>
    %6 = vector.multi_reduction <add>, %5, %cst [1] : vector<4x512xf32> to vector<4xf32>
    %7 = vector.shape_cast %6 : vector<4xf32> to vector<4x1xf32>
    %cst_2 = arith.constant 0.001953125 : f32
    %8 = vector.broadcast %cst_2 : f32 to vector<4x1xf32>
    %9 = arith.mulf %7, %8 : vector<4x1xf32>
    %10 = vector.broadcast %9 : vector<4x1xf32> to vector<4x512xf32>
    %11 = arith.subf %5, %10 : vector<4x512xf32>
    %12 = arith.mulf %11, %11 : vector<4x512xf32>
    %cst_3 = arith.constant dense<0.000000e+00> : vector<4xf32>
    %13 = vector.multi_reduction <add>, %12, %cst_3 [1] : vector<4x512xf32> to vector<4xf32>
    %14 = vector.shape_cast %13 : vector<4xf32> to vector<4x1xf32>
    %cst_4 = arith.constant 0.001953125 : f32
    %15 = vector.broadcast %cst_4 : f32 to vector<4x1xf32>
    %16 = arith.mulf %14, %15 : vector<4x1xf32>
    %c0_5 = arith.constant 0 : index
    %c0_6 = arith.constant 0 : index
    %17 = vector.load %arg2[%c0_5, %c0_6] : memref<4x1xf32, #tpu.memory_space<vmem>>, vector<4x1xf32>
    %cst_7 = arith.constant 9.99999974E-6 : f32
    %18 = vector.broadcast %cst_7 : f32 to vector<4x1xf32>
    %19 = arith.addf %16, %18 : vector<4x1xf32>
    %20 = math.rsqrt %19 : vector<4x1xf32>
    %21 = arith.mulf %17, %20 : vector<4x1xf32>
    %c0_8 = arith.constant 0 : index
    %c0_9 = arith.constant 0 : index
    %22 = vector.load %arg3[%c0_8, %c0_9] : memref<4x1xf32, #tpu.memory_space<vmem>>, vector<4x1xf32>
    %23 = arith.mulf %9, %21 : vector<4x1xf32>
    %24 = arith.subf %22, %23 : vector<4x1xf32>
    %25 = vector.broadcast %21 : vector<4x1xf32> to vector<4x512xf32>
    %26 = arith.mulf %5, %25 : vector<4x512xf32>
    %27 = vector.broadcast %24 : vector<4x1xf32> to vector<4x512xf32>
    %28 = arith.addf %26, %27 : vector<4x512xf32>
    %cst_10 = arith.constant 0.000000e+00 : f32
    %29 = vector.broadcast %cst_10 : f32 to vector<4x512xf32>
    %30 = arith.maximumf %28, %29 : vector<4x512xf32>
    %c0_11 = arith.constant 0 : index
    %c0_12 = arith.constant 0 : index
    %31 = vector.load %arg4[%c0_11, %c0_12] : memref<16x4xf32, #tpu.memory_space<vmem>>, vector<16x4xf32>
    %32 = vector.extract_strided_slice %31 {offsets = [0, 0], sizes = [16, 1], strides = [1, 1]} : vector<16x4xf32> to vector<16x1xf32>
    %33 = vector.extract_strided_slice %30 {offsets = [0, 0], sizes = [1, 512], strides = [1, 1]} : vector<4x512xf32> to vector<1x512xf32>
    %34 = vector.broadcast %32 : vector<16x1xf32> to vector<16x512xf32>
    %35 = vector.broadcast %33 : vector<1x512xf32> to vector<16x512xf32>
    %36 = arith.mulf %34, %35 : vector<16x512xf32>
    %37 = vector.extract_strided_slice %31 {offsets = [0, 1], sizes = [16, 1], strides = [1, 1]} : vector<16x4xf32> to vector<16x1xf32>
    %38 = vector.extract_strided_slice %30 {offsets = [1, 0], sizes = [1, 512], strides = [1, 1]} : vector<4x512xf32> to vector<1x512xf32>
    %39 = vector.broadcast %37 : vector<16x1xf32> to vector<16x512xf32>
    %40 = vector.broadcast %38 : vector<1x512xf32> to vector<16x512xf32>
    %41 = arith.mulf %39, %40 : vector<16x512xf32>
    %42 = arith.addf %36, %41 : vector<16x512xf32>
    %43 = vector.extract_strided_slice %31 {offsets = [0, 2], sizes = [16, 1], strides = [1, 1]} : vector<16x4xf32> to vector<16x1xf32>
    %44 = vector.extract_strided_slice %30 {offsets = [2, 0], sizes = [1, 512], strides = [1, 1]} : vector<4x512xf32> to vector<1x512xf32>
    %45 = vector.broadcast %43 : vector<16x1xf32> to vector<16x512xf32>
    %46 = vector.broadcast %44 : vector<1x512xf32> to vector<16x512xf32>
    %47 = arith.mulf %45, %46 : vector<16x512xf32>
    %48 = arith.addf %42, %47 : vector<16x512xf32>
    %49 = vector.extract_strided_slice %31 {offsets = [0, 3], sizes = [16, 1], strides = [1, 1]} : vector<16x4xf32> to vector<16x1xf32>
    %50 = vector.extract_strided_slice %30 {offsets = [3, 0], sizes = [1, 512], strides = [1, 1]} : vector<4x512xf32> to vector<1x512xf32>
    %51 = vector.broadcast %49 : vector<16x1xf32> to vector<16x512xf32>
    %52 = vector.broadcast %50 : vector<1x512xf32> to vector<16x512xf32>
    %53 = arith.mulf %51, %52 : vector<16x512xf32>
    %54 = arith.addf %48, %53 : vector<16x512xf32>
    %cst_13 = arith.constant dense<0.000000e+00> : vector<16xf32>
    %55 = vector.multi_reduction <add>, %54, %cst_13 [1] : vector<16x512xf32> to vector<16xf32>
    %56 = vector.shape_cast %55 : vector<16xf32> to vector<16x1xf32>
    %cst_14 = arith.constant 0.001953125 : f32
    %57 = vector.broadcast %cst_14 : f32 to vector<16x1xf32>
    %58 = arith.mulf %56, %57 : vector<16x1xf32>
    %59 = vector.broadcast %58 : vector<16x1xf32> to vector<16x512xf32>
    %60 = arith.subf %54, %59 : vector<16x512xf32>
    %61 = arith.mulf %60, %60 : vector<16x512xf32>
    %cst_15 = arith.constant dense<0.000000e+00> : vector<16xf32>
    %62 = vector.multi_reduction <add>, %61, %cst_15 [1] : vector<16x512xf32> to vector<16xf32>
    %63 = vector.shape_cast %62 : vector<16xf32> to vector<16x1xf32>
    %cst_16 = arith.constant 0.001953125 : f32
    %64 = vector.broadcast %cst_16 : f32 to vector<16x1xf32>
    %65 = arith.mulf %63, %64 : vector<16x1xf32>
    %c0_17 = arith.constant 0 : index
    %c0_18 = arith.constant 0 : index
    %66 = vector.load %arg5[%c0_17, %c0_18] : memref<16x1xf32, #tpu.memory_space<vmem>>, vector<16x1xf32>
    %cst_19 = arith.constant 9.99999974E-6 : f32
    %67 = vector.broadcast %cst_19 : f32 to vector<16x1xf32>
    %68 = arith.addf %65, %67 : vector<16x1xf32>
    %69 = math.rsqrt %68 : vector<16x1xf32>
    %70 = arith.mulf %66, %69 : vector<16x1xf32>
    %c0_20 = arith.constant 0 : index
    %c0_21 = arith.constant 0 : index
    %71 = vector.load %arg6[%c0_20, %c0_21] : memref<16x1xf32, #tpu.memory_space<vmem>>, vector<16x1xf32>
    %72 = arith.mulf %58, %70 : vector<16x1xf32>
    %73 = arith.subf %71, %72 : vector<16x1xf32>
    %74 = vector.broadcast %70 : vector<16x1xf32> to vector<16x512xf32>
    %75 = arith.mulf %54, %74 : vector<16x512xf32>
    %76 = vector.broadcast %73 : vector<16x1xf32> to vector<16x512xf32>
    %77 = arith.addf %75, %76 : vector<16x512xf32>
    %cst_22 = arith.constant 0.000000e+00 : f32
    %78 = vector.broadcast %cst_22 : f32 to vector<16x512xf32>
    %79 = arith.maximumf %77, %78 : vector<16x512xf32>
    %c0_23 = arith.constant 0 : index
    %c0_24 = arith.constant 0 : index
    %80 = vector.load %arg8[%c0_23, %c0_24] : memref<9x512xf32, #tpu.memory_space<vmem>>, vector<9x512xf32>
    %c17_i32 = arith.constant 17 : i32
    %81 = tpu.dynamic_rotate %79 by %c17_i32 dim 1 : vector<16x512xf32>, i32 -> vector<16x512xf32>
    %82 = vector.extract_strided_slice %80 {offsets = [0, 0], sizes = [1, 512], strides = [1, 1]} : vector<9x512xf32> to vector<1x512xf32>
    %83 = vector.broadcast %82 : vector<1x512xf32> to vector<16x512xf32>
    %84 = arith.mulf %81, %83 : vector<16x512xf32>
    %c16_i32 = arith.constant 16 : i32
    %85 = tpu.dynamic_rotate %79 by %c16_i32 dim 1 : vector<16x512xf32>, i32 -> vector<16x512xf32>
    %86 = vector.extract_strided_slice %80 {offsets = [1, 0], sizes = [1, 512], strides = [1, 1]} : vector<9x512xf32> to vector<1x512xf32>
    %87 = vector.broadcast %86 : vector<1x512xf32> to vector<16x512xf32>
    %88 = arith.mulf %85, %87 : vector<16x512xf32>
    %c15_i32 = arith.constant 15 : i32
    %89 = tpu.dynamic_rotate %79 by %c15_i32 dim 1 : vector<16x512xf32>, i32 -> vector<16x512xf32>
    %90 = vector.extract_strided_slice %80 {offsets = [2, 0], sizes = [1, 512], strides = [1, 1]} : vector<9x512xf32> to vector<1x512xf32>
    %91 = vector.broadcast %90 : vector<1x512xf32> to vector<16x512xf32>
    %92 = arith.mulf %89, %91 : vector<16x512xf32>
    %c1_i32 = arith.constant 1 : i32
    %93 = tpu.dynamic_rotate %79 by %c1_i32 dim 1 : vector<16x512xf32>, i32 -> vector<16x512xf32>
    %94 = vector.extract_strided_slice %80 {offsets = [3, 0], sizes = [1, 512], strides = [1, 1]} : vector<9x512xf32> to vector<1x512xf32>
    %95 = vector.broadcast %94 : vector<1x512xf32> to vector<16x512xf32>
    %96 = arith.mulf %93, %95 : vector<16x512xf32>
    %c511_i32 = arith.constant 511 : i32
    %97 = tpu.dynamic_rotate %79 by %c511_i32 dim 1 : vector<16x512xf32>, i32 -> vector<16x512xf32>
    %98 = vector.extract_strided_slice %80 {offsets = [5, 0], sizes = [1, 512], strides = [1, 1]} : vector<9x512xf32> to vector<1x512xf32>
    %99 = vector.broadcast %98 : vector<1x512xf32> to vector<16x512xf32>
    %100 = arith.mulf %97, %99 : vector<16x512xf32>
    %c497_i32 = arith.constant 497 : i32
    %101 = tpu.dynamic_rotate %79 by %c497_i32 dim 1 : vector<16x512xf32>, i32 -> vector<16x512xf32>
    %102 = vector.extract_strided_slice %80 {offsets = [6, 0], sizes = [1, 512], strides = [1, 1]} : vector<9x512xf32> to vector<1x512xf32>
    %103 = vector.broadcast %102 : vector<1x512xf32> to vector<16x512xf32>
    %104 = arith.mulf %101, %103 : vector<16x512xf32>
    %c496_i32 = arith.constant 496 : i32
    %105 = tpu.dynamic_rotate %79 by %c496_i32 dim 1 : vector<16x512xf32>, i32 -> vector<16x512xf32>
    %106 = vector.extract_strided_slice %80 {offsets = [7, 0], sizes = [1, 512], strides = [1, 1]} : vector<9x512xf32> to vector<1x512xf32>
    %107 = vector.broadcast %106 : vector<1x512xf32> to vector<16x512xf32>
    %108 = arith.mulf %105, %107 : vector<16x512xf32>
    %c495_i32 = arith.constant 495 : i32
    %109 = tpu.dynamic_rotate %79 by %c495_i32 dim 1 : vector<16x512xf32>, i32 -> vector<16x512xf32>
    %110 = vector.extract_strided_slice %80 {offsets = [8, 0], sizes = [1, 512], strides = [1, 1]} : vector<9x512xf32> to vector<1x512xf32>
    %111 = vector.broadcast %110 : vector<1x512xf32> to vector<16x512xf32>
    %112 = arith.mulf %109, %111 : vector<16x512xf32>
    %113 = tpu.concatenate %84, %88, %92, %96, %79, %100, %104, %108, %112 in 0 : vector<16x512xf32>, vector<16x512xf32>, vector<16x512xf32>, vector<16x512xf32>, vector<16x512xf32>, vector<16x512xf32>, vector<16x512xf32>, vector<16x512xf32>, vector<16x512xf32> -> vector<144x512xf32>
    %c0_25 = arith.constant 0 : index
    %c0_26 = arith.constant 0 : index
    %114 = vector.load %arg7[%c0_25, %c0_26] : memref<4x144xbf16, #tpu.memory_space<vmem>>, vector<4x144xbf16>
    %115 = arith.truncf %113 : vector<144x512xf32> to vector<144x512xbf16>
    %cst_27 = arith.constant dense<0.000000e+00> : vector<4x512xf32>
    %116 = tpu.matmul %114, %115, %cst_27 {dimension_numbers = #tpu.dot_dimension_numbers<[1], [0], [0], [1], [0, 0, 1, 1], [], []>} : vector<4x144xbf16>, vector<144x512xbf16>, vector<4x512xf32> -> vector<4x512xf32>
    %117 = vector.extract_strided_slice %116 {offsets = [0, 0], sizes = [4, 256], strides = [1, 1]} : vector<4x512xf32> to vector<4x256xf32>
    %c0_28 = arith.constant 0 : index
    %c0_29 = arith.constant 0 : index
    %c0_30 = arith.constant 0 : index
    %118 = vector.load %arg9[%c0_28, %c0_29, %c0_30] : memref<2x4x256xf32, #tpu.memory_space<vmem>>, vector<1x4x256xf32>
    %119 = vector.shape_cast %118 : vector<1x4x256xf32> to vector<4x256xf32>
    %120 = vector.shape_cast %117 : vector<4x256xf32> to vector<1x4x256xf32>
    tpu.vector_store %arg9[%c0_28, %c0_29, %c0_30], %120 {strides = array<i32>} : memref<2x4x256xf32, #tpu.memory_space<vmem>>, vector<1x4x256xf32>,
    %121 = vector.extract_strided_slice %116 {offsets = [0, 256], sizes = [4, 256], strides = [1, 1]} : vector<4x512xf32> to vector<4x256xf32>
    %c1 = arith.constant 1 : index
    %c0_31 = arith.constant 0 : index
    %c0_32 = arith.constant 0 : index
    %122 = vector.load %arg9[%c1, %c0_31, %c0_32] : memref<2x4x256xf32, #tpu.memory_space<vmem>>, vector<1x4x256xf32>
    %123 = vector.shape_cast %122 : vector<1x4x256xf32> to vector<4x256xf32>
    %124 = vector.shape_cast %121 : vector<4x256xf32> to vector<1x4x256xf32>
    tpu.vector_store %arg9[%c1, %c0_31, %c0_32], %124 {strides = array<i32>} : memref<2x4x256xf32, #tpu.memory_space<vmem>>, vector<1x4x256xf32>,
    return
  }
  func.func @transform_0(%arg0: i32) -> (i32, i32, i32) {
    %c0_i32 = arith.constant 0 : i32
    %c0_i32_0 = arith.constant 0 : i32
    %c0_i32_1 = arith.constant 0 : i32
    %c0_i32_2 = arith.constant 0 : i32
    return %c0_i32, %c0_i32_0, %c0_i32_1 : i32, i32, i32
  }
  func.func @transform_1(%arg0: i32) -> (i32, i32) {
    %c0_i32 = arith.constant 0 : i32
    %c0_i32_0 = arith.constant 0 : i32
    %c0_i32_1 = arith.constant 0 : i32
    return %c0_i32, %c0_i32_0 : i32, i32
  }
  func.func @transform_2(%arg0: i32) -> (i32, i32) {
    %c0_i32 = arith.constant 0 : i32
    %c0_i32_0 = arith.constant 0 : i32
    %c0_i32_1 = arith.constant 0 : i32
    return %c0_i32, %c0_i32_0 : i32, i32
  }
  func.func @transform_3(%arg0: i32) -> (i32, i32) {
    %c0_i32 = arith.constant 0 : i32
    %c0_i32_0 = arith.constant 0 : i32
    %c0_i32_1 = arith.constant 0 : i32
    return %c0_i32, %c0_i32_0 : i32, i32
  }
  func.func @transform_4(%arg0: i32) -> (i32, i32) {
    %c0_i32 = arith.constant 0 : i32
    %c0_i32_0 = arith.constant 0 : i32
    %c0_i32_1 = arith.constant 0 : i32
    return %c0_i32, %c0_i32_0 : i32, i32
  }
  func.func @transform_5(%arg0: i32) -> (i32, i32) {
    %c0_i32 = arith.constant 0 : i32
    %c0_i32_0 = arith.constant 0 : i32
    %c0_i32_1 = arith.constant 0 : i32
    return %c0_i32, %c0_i32_0 : i32, i32
  }
  func.func @transform_6(%arg0: i32) -> (i32, i32) {
    %c0_i32 = arith.constant 0 : i32
    %c0_i32_0 = arith.constant 0 : i32
    %c0_i32_1 = arith.constant 0 : i32
    return %c0_i32, %c0_i32_0 : i32, i32
  }
  func.func @transform_7(%arg0: i32) -> (i32, i32) {
    %c0_i32 = arith.constant 0 : i32
    %c0_i32_0 = arith.constant 0 : i32
    %c0_i32_1 = arith.constant 0 : i32
    return %c0_i32, %c0_i32_0 : i32, i32
  }
  func.func @transform_8(%arg0: i32) -> (i32, i32, i32) {
    %c0_i32 = arith.constant 0 : i32
    %c0_i32_0 = arith.constant 0 : i32
    %c0_i32_1 = arith.constant 0 : i32
    %c0_i32_2 = arith.constant 0 : i32
    return %c0_i32, %c0_i32_0, %c0_i32_1 : i32, i32, i32
  }
}

</mosaic_0001>

<bundles_post_ra>
// kernel: bottleneck_forward.1
= control target key start
LH: loop header
LB: loop body
LE: loop exit
PB: predicated region body
PF: predicated region fallthrough
CT: control target
= control target key end

     0   :  { %vm44_vm0 = vcmask 1043456   ;;  %v845_v31 = vmov 1   ;;  %v846_v33 = vmov 0   ;;  %v847_v38 = vmov 2   ;;  %s851_s22 = smov 113   ;;  %s852_s23 = smov 1   ;;  %s1618_s0 = inlined_call_operand.vmem [shape: f32[2,4,256], index: 0, kind: input, shape index: {}]   ;;  %s1619_s6 = inlined_call_operand.vmem [shape: bf16[4,144], index: 6, kind: input, shape index: {}]   ;;  %s1620_s3 = inlined_call_operand.vmem [shape: f32[16,4], index: 3, kind: input, shape index: {}]   ;;  %s1621_s1 = inlined_call_operand.vmem [shape: f32[4,1], index: 1, kind: input, shape index: {}]   ;;  %s1622_s2 = inlined_call_operand.vmem [shape: f32[4,1], index: 2, kind: input, shape index: {}]   ;;  %s1623_s4 = inlined_call_operand.vmem [shape: f32[16,1], index: 4, kind: input, shape index: {}]   ;;  %s1624_s5 = inlined_call_operand.vmem [shape: f32[16,1], index: 5, kind: input, shape index: {}]   ;;  %s1625_s7 = inlined_call_operand.vmem [shape: f32[9,512], index: 7, kind: input, shape index: {}]   ;;  %s1626_s8 = inlined_call_operand.vmem [shape: f32[2,4,256], index: 8, kind: output, shape index: {}]  }
   0x1   :  { %v30_v0 = vld [vmem:[%s1618_s0] sm:$0xff]  ;;  %v31_v1 = vld [vmem:[%s1618_s0 + $0x8] sm:$0xff]  ;;  %826 = vset.pattern.permute.xlu1 %v845_v31  ;;  %825 = vset.pattern.permute.xlu0 %v845_v31  ;;  %v848_v44 = vmov 3   ;;  %s853_s24 = smov 15   ;;  %s854_s25 = smov 16  }
   0x2   :  { %33 = vst [vmem:[#allocation1] ss:$2 sm:$0xff] %v30_v0  ;;  %v641_v7 = vld [vmem:[%s1619_s6] sm:$0xf]  ;;  %v112_v32 = vld [vmem:[%s1620_s3 + $0x8] sm:$0xff]  ;;  %824 = vset.pattern.permute.xlu2 %v846_v33  ;;  %s855_s26 = smov 17  }
   0x3   :  { %140 = vperm.xlu1 %826, %v112_v32   ;;  %v111_v34 = vld [vmem:[%s1620_s3] sm:$0xff]  ;;  %s856_s27 = smov 111  }
   0x4   :  { %115 = vperm.xlu2 %824, %v111_v34   ;;  %v73_v45 = vld [vmem:[%s1621_s1] sm:$0xf] }
   0x5   :  { %v86_v50 = vld [vmem:[%s1622_s2] sm:$0xf] }
   0x9   :  { %v908_v2 = vld.sshfl [vmem:[#allocation1] sm:$0xff pattern:$0x75316420]  ;;  %v910_v3 = vld.sshfl [vmem:[#allocation1 + $0x8] sm:$0xff pattern:$0x75316420] }
   0xa   :  { %39 = vst [vmem:[#allocation1] ss:$2 sm:$0xff] %v31_v1  ;;  %v45_v4 = vsel %vm44_vm0, %v908_v2, 0.0  ;;  %v46_v5 = vsel %vm44_vm0, %v910_v3, 0.0 }
   0xb   :  { %v47_v6 = vadd.f32 %v46_v5, %v45_v4  ;;  %828 = vset.pattern.permute.xlu1 %v846_v33 }
   0xc   :  { %120 = vperm.xlu2 %824, %v112_v32  }
  0x11   :  { %v919_v8 = vld.sshfl [vmem:[#allocation1] sm:$0xff pattern:$0x75316420]  ;;  %v921_v9 = vld.sshfl [vmem:[#allocation1 + $0x8] sm:$0xff pattern:$0x75316420] }
  0x12   :  { %v48_v10 = vsel %vm44_vm0, %v919_v8, 0.0  ;;  %v50_v11 = vsel %vm44_vm0, %v921_v9, 0.0  ;;  %679 = vst [vmem:[#allocation1] ss:$4 sm:$0xff] %v641_v7 }
  0x13   :  { %v49_v12 = vadd.f32 %v48_v10, %v47_v6 }
  0x14   :  { %827 = vset.pattern.permute.xlu2 %v847_v38 }
  0x15   :  { %v51_v13 = vadd.f32 %v50_v11, %v49_v12  ;;  %164 = vperm.xlu2 %827, %v111_v34  }
  0x17   :  { %52 = vadd.xlane.f32.xlu0 %v51_v13 }
  0x1d   :  { %830 = vset.pattern.permute.xlu2 %v848_v44 }
  0x1e   :  { %192 = vperm.xlu2 %830, %v111_v34  }
  0x26   :  { %832 = vset.pattern.permute.xlu2 %v846_v33 }
  0x5e   :  { %v116_v52 = vpop.permute.xlu2 %115 }
  0x66   :  { %v121_v54 = vpop.permute.xlu2 %120 }
  0x6f   :  { %v165_v60 = vpop.permute.xlu2 %164 }
  0x75   :  { %v141_v53 = vpop.permute.xlu1 %140 }
  0x8a   :  { %v53_v14 = vpop.xlane.xlu0 %52 }
  0x8b   :  { %v54_v15 = vmul.f32 0.001953125, %v53_v14 }
  0x8d   :  { %v55_v16 = vsub.f32 %v908_v2, %v54_v15  ;;  %v56_v17 = vsub.f32 %v910_v3, %v54_v15  ;;  %v57_v18 = vsub.f32 %v919_v8, %v54_v15  ;;  %v58_v19 = vsub.f32 %v921_v9, %v54_v15 }
  0x8f   :  { %v59_v20 = vmul.f32 %v55_v16, %v55_v16  ;;  %v60_v21 = vmul.f32 %v56_v17, %v56_v17  ;;  %v61_v22 = vmul.f32 %v57_v18, %v57_v18  ;;  %v62_v23 = vmul.f32 %v58_v19, %v58_v19 }
  0x91   :  { %v63_v24 = vsel %vm44_vm0, %v59_v20, 0.0  ;;  %v64_v25 = vsel %vm44_vm0, %v60_v21, 0.0  ;;  %v66_v27 = vsel %vm44_vm0, %v61_v22, 0.0  ;;  %v68_v29 = vsel %vm44_vm0, %v62_v23, 0.0  ;;  %v193_v22 = vpop.permute.xlu2 %192 }
  0x92   :  { %v65_v26 = vadd.f32 %v64_v25, %v63_v24 }
  0x94   :  { %v67_v28 = vadd.f32 %v66_v27, %v65_v26 }
  0x96   :  { %v69_v30 = vadd.f32 %v68_v29, %v67_v28 }
  0x98   :  { %70 = vadd.xlane.f32.xlu0 %v69_v30 }
  0xac   :  { %136 = vperm.xlu0 %825, %v111_v34  }
  0xb4   :  { %834 = vset.pattern.permute.xlu0 %v846_v33 }
 0x10b   :  { %v71_v35 = vpop.xlane.xlu0 %70 }
 0x10c   :  { %v72_v36 = vmul.f32 0.001953125, %v71_v35 }
 0x10e   :  { %v74_v37 = vadd.f32 1e-05, %v72_v36 }
 0x110   :  { %839 = vrsqrt.f32 %v74_v37  ;;  %vm81_vm2 = vweird.f32 %v74_v37 }
 0x116   :  { %v840_v39 = vpop.eup %839 }
 0x117   :  { %v76_v40 = vmul.f32 %v840_v39, %v74_v37  ;;  %vm82_vm1 = vweird.f32 %v840_v39 }
 0x118   :  { %vm83_vm3 = vmor %vm81_vm2, %vm82_vm1 }
 0x119   :  { %v77_v41 = vmul.f32 %v840_v39, %v76_v40 }
 0x11b   :  { %v78_v42 = vmul.f32 0.5, %v77_v41 }
 0x11d   :  { %v79_v43 = vsub.f32 1.5, %v78_v42 }
 0x11e   :  { %v137_v20 = vpop.permute.xlu0 %136 }
 0x11f   :  { %v80_v46 = vmul.f32 %v840_v39, %v79_v43 }
 0x121   :  { %v84_v47 = vsel %vm83_vm3, %v840_v39, %v80_v46  ;;  %vm683_vm3 = vcmask 130048  }
 0x122   :  { %v85_v48 = vmul.f32 %v84_v47, %v73_v45 }
 0x124   :  { %91 = vperm.xlu1 %828, %v85_v48   ;;  %v87_v49 = vmul.f32 %v85_v48, %v54_v15 }
 0x126   :  { %v88_v51 = vsub.f32 %v86_v50, %v87_v49 }
 0x12c   :  { %100 = vperm.xlu1 %828, %v88_v51  }
 0x134   :  { %829 = vset.pattern.permute.xlu1 %v847_v38 }
 0x135   :  { %168 = vperm.xlu1 %829, %v112_v32  }
 0x13d   :  { %831 = vset.pattern.permute.xlu1 %v848_v44 }
 0x13e   :  { %196 = vperm.xlu1 %831, %v112_v32  }
 0x146   :  { %833 = vset.pattern.permute.xlu1 %v846_v33 }
 0x196   :  { %v92_v55 = vpop.permute.xlu1 %91 }
 0x197   :  { %v94_v56 = vmul.f32 %v92_v55, %v908_v2  ;;  %v95_v57 = vmul.f32 %v92_v55, %v910_v3  ;;  %v96_v58 = vmul.f32 %v92_v55, %v919_v8  ;;  %v97_v59 = vmul.f32 %v92_v55, %v921_v9 }
 0x19e   :  { %v101_v61 = vpop.permute.xlu1 %100 }
 0x19f   :  { %v103_v62 = vadd.f32 %v101_v61, %v94_v56  ;;  %v104_v63 = vadd.f32 %v101_v61, %v95_v57  ;;  %v105_v0 = vadd.f32 %v101_v61, %v96_v58  ;;  %v106_v1 = vadd.f32 %v101_v61, %v97_v59 }
 0x1a1   :  { %v107_v4 = vmax.f32 %v103_v62, 0.0  ;;  %v108_v5 = vmax.f32 %v104_v63, 0.0  ;;  %v951_v6 = vmax.f32 %v105_v0, 0.0  ;;  %v953_v7 = vmax.f32 %v106_v1, 0.0 }
 0x1a3   :  { %v123_v10 = vperm.slane %v107_v4, 0  ;;  %v124_v2 = vperm.slane %v108_v5, 0  ;;  %v125_v3 = vperm.slane %v951_v6, 0  ;;  %v126_v8 = vperm.slane %v953_v7, 0 }
 0x1a4   :  { %v199_v11 = vperm.slane %v107_v4, 3  ;;  %v200_v9 = vperm.slane %v108_v5, 3  ;;  %v143_v16 = vperm.slane %v107_v4, 1  ;;  %v144_v17 = vperm.slane %v108_v5, 1 }
 0x1a5   :  { %v127_v12 = vmul.f32 %v123_v10, %v116_v52  ;;  %v128_v13 = vmul.f32 %v124_v2, %v116_v52  ;;  %v129_v14 = vmul.f32 %v125_v3, %v116_v52  ;;  %v130_v15 = vmul.f32 %v126_v8, %v116_v52 }
 0x1a6   :  { %v145_v18 = vperm.slane %v951_v6, 1  ;;  %v146_v19 = vperm.slane %v953_v7, 1  ;;  %v131_v23 = vmul.f32 %v123_v10, %v121_v54  ;;  %v132_v24 = vmul.f32 %v124_v2, %v121_v54 }
 0x1a7   :  { %v169_v21 = vpop.permute.xlu1 %168  ;;  %v133_v25 = vmul.f32 %v125_v3, %v121_v54  ;;  %v134_v26 = vmul.f32 %v126_v8, %v121_v54  ;;  %v151_v27 = vmul.f32 %v143_v16, %v141_v53  ;;  %v152_v28 = vmul.f32 %v144_v17, %v141_v53 }
 0x1a8   :  { %v153_v29 = vmul.f32 %v145_v18, %v141_v53  ;;  %v154_v30 = vmul.f32 %v146_v19, %v141_v53  ;;  %v147_v31 = vmul.f32 %v143_v16, %v137_v20  ;;  %v148_v32 = vmul.f32 %v144_v17, %v137_v20 }
 0x1a9   :  { %v149_v33 = vmul.f32 %v145_v18, %v137_v20  ;;  %v150_v34 = vmul.f32 %v146_v19, %v137_v20  ;;  %v201_v35 = vperm.slane %v951_v6, 3  ;;  %v202_v36 = vperm.slane %v953_v7, 3 }
 0x1aa   :  { %v203_v37 = vmul.f32 %v199_v11, %v193_v22  ;;  %v204_v38 = vmul.f32 %v200_v9, %v193_v22  ;;  %v155_v39 = vadd.f32 %v147_v31, %v127_v12  ;;  %v156_v40 = vadd.f32 %v148_v32, %v128_v13 }
 0x1ab   :  { %v159_v41 = vadd.f32 %v151_v27, %v131_v23  ;;  %v160_v42 = vadd.f32 %v152_v28, %v132_v24  ;;  %v171_v43 = vperm.slane %v107_v4, 2  ;;  %v172_v44 = vperm.slane %v108_v5, 2 }
 0x1ac   :  { %v173_v45 = vperm.slane %v951_v6, 2  ;;  %v174_v46 = vperm.slane %v953_v7, 2  ;;  %v157_v47 = vadd.f32 %v149_v33, %v129_v14  ;;  %v158_v48 = vadd.f32 %v150_v34, %v130_v15 }
 0x1ad   :  { %v161_v49 = vadd.f32 %v153_v29, %v133_v25  ;;  %v162_v50 = vadd.f32 %v154_v30, %v134_v26  ;;  %v175_v51 = vmul.f32 %v171_v43, %v165_v60  ;;  %v176_v52 = vmul.f32 %v172_v44, %v165_v60 }
 0x1ae   :  { %v177_v53 = vmul.f32 %v173_v45, %v165_v60  ;;  %v178_v54 = vmul.f32 %v174_v46, %v165_v60  ;;  %v179_v55 = vmul.f32 %v171_v43, %v169_v21  ;;  %v180_v56 = vmul.f32 %v172_v44, %v169_v21 }
 0x1af   :  { %v181_v57 = vmul.f32 %v173_v45, %v169_v21  ;;  %v182_v58 = vmul.f32 %v174_v46, %v169_v21  ;;  %v183_v61 = vadd.f32 %v175_v51, %v155_v39  ;;  %v184_v62 = vadd.f32 %v176_v52, %v156_v40 }
 0x1b0   :  { %v197_v59 = vpop.permute.xlu1 %196  ;;  %v205_v1 = vmul.f32 %v201_v35, %v193_v22  ;;  %v187_v4 = vadd.f32 %v179_v55, %v159_v41  ;;  %v188_v5 = vadd.f32 %v180_v56, %v160_v42  ;;  %v185_v2 = vadd.f32 %v177_v53, %v157_v47 }
 0x1b1   :  { %v207_v63 = vmul.f32 %v199_v11, %v197_v59  ;;  %v208_v0 = vmul.f32 %v200_v9, %v197_v59  ;;  %v189_v6 = vadd.f32 %v181_v57, %v161_v49  ;;  %v209_v7 = vmul.f32 %v201_v35, %v197_v59 }
 0x1b2   :  { %v210_v10 = vmul.f32 %v202_v36, %v197_v59  ;;  %v186_v3 = vadd.f32 %v178_v54, %v158_v48  ;;  %v967_v12 = vadd.f32 %v203_v37, %v183_v61  ;;  %v969_v13 = vadd.f32 %v204_v38, %v184_v62 }
 0x1b3   :  { %v963_v8 = vadd.f32 %v207_v63, %v187_v4  ;;  %v965_v60 = vadd.f32 %v208_v0, %v188_v5  ;;  %v206_v14 = vmul.f32 %v202_v36, %v193_v22  ;;  %v190_v15 = vadd.f32 %v182_v58, %v162_v50  ;;  %v259_v5 = vld [vmem:[%s1623_s4] sm:$0xff] }
 0x1b4   :  { %v971_v11 = vadd.f32 %v209_v7, %v189_v6  ;;  %v973_v9 = vadd.f32 %v205_v1, %v185_v2  ;;  %v219_v16 = vadd.f32 %v969_v13, %v967_v12  ;;  %v260_v7 = vld [vmem:[%s1623_s4 + $0x8] sm:$0xff]  ;;  %s849_s4 = smov 112  }
 0x1b5   :  { %v224_v17 = vadd.f32 %v965_v60, %v963_v8  ;;  %v979_v18 = vadd.f32 %v206_v14, %v186_v3  ;;  %v982_v20 = vadd.f32 %v210_v10, %v190_v15  ;;  %v285_v15 = vld [vmem:[%s1624_s5] sm:$0xff] }
 0x1b6   :  { %v220_v19 = vadd.f32 %v219_v16, %v973_v9 }
 0x1b7   :  { %v225_v21 = vadd.f32 %v224_v17, %v971_v11 }
 0x1b8   :  { %v221_v22 = vadd.f32 %v220_v19, %v979_v18  ;;  %v286_v19 = vld [vmem:[%s1624_s5 + $0x8] sm:$0xff]  ;;  %s850_s5 = smov 127  }
 0x1b9   :  { %v226_v23 = vadd.f32 %v225_v21, %v982_v20 }
 0x1ba   :  { %222 = vadd.xlane.f32.xlu2 %v221_v22 }
 0x1bb   :  { %227 = vadd.xlane.f32.xlu1 %v226_v23 }
 0x22d   :  { %v223_v24 = vpop.xlane.xlu2 %222 }
 0x22e   :  { %v228_v25 = vpop.xlane.xlu1 %227  ;;  %v229_v26 = vmul.f32 0.001953125, %v223_v24 }
 0x22f   :  { %v987_v27 = vmul.f32 0.001953125, %v228_v25 }
 0x230   :  { %v231_v28 = vsub.f32 %v967_v12, %v229_v26  ;;  %v232_v29 = vsub.f32 %v969_v13, %v229_v26  ;;  %v233_v30 = vsub.f32 %v973_v9, %v229_v26  ;;  %v234_v34 = vsub.f32 %v979_v18, %v229_v26 }
 0x231   :  { %v235_v31 = vsub.f32 %v963_v8, %v987_v27  ;;  %v236_v32 = vsub.f32 %v965_v60, %v987_v27  ;;  %v237_v33 = vsub.f32 %v971_v11, %v987_v27  ;;  %v238_v37 = vsub.f32 %v982_v20, %v987_v27 }
 0x232   :  { %v239_v35 = vmul.f32 %v231_v28, %v231_v28  ;;  %v240_v36 = vmul.f32 %v232_v29, %v232_v29  ;;  %v241_v40 = vmul.f32 %v233_v30, %v233_v30  ;;  %v242_v44 = vmul.f32 %v234_v34, %v234_v34 }
 0x233   :  { %v243_v38 = vmul.f32 %v235_v31, %v235_v31  ;;  %v244_v39 = vmul.f32 %v236_v32, %v236_v32  ;;  %v245_v42 = vmul.f32 %v237_v33, %v237_v33  ;;  %v246_v46 = vmul.f32 %v238_v37, %v238_v37 }
 0x234   :  { %v247_v41 = vadd.f32 %v240_v36, %v239_v35 }
 0x235   :  { %v252_v43 = vadd.f32 %v244_v39, %v243_v38 }
 0x236   :  { %v248_v45 = vadd.f32 %v247_v41, %v241_v40 }
 0x237   :  { %v253_v47 = vadd.f32 %v252_v43, %v245_v42 }
 0x238   :  { %v249_v48 = vadd.f32 %v248_v45, %v242_v44 }
 0x239   :  { %v254_v49 = vadd.f32 %v253_v47, %v246_v46  ;;  %v359_v47 = vlaneseq }
 0x23a   :  { %250 = vadd.xlane.f32.xlu0 %v249_v48 }
 0x23b   :  { %255 = vadd.xlane.f32.xlu2 %v254_v49  ;;  %v1136_v49 = vand.u32 127, %v359_v47 }
 0x23d   :  { %vm583_vm10 = vcmp.lt.s32.totalorder %v1136_v49, 112  ;;  %vm546_vm11 = vcmp.lt.s32.totalorder %v1136_v49, 113  ;;  %vm509_vm12 = vcmp.lt.s32.totalorder %v1136_v49, 127  ;;  %vm472_vm13 = vcmp.lt.s32.totalorder %v1136_v49, 1 }
 0x23e   :  { %vm435_vm14 = vcmp.lt.s32.totalorder %v1136_v49, 15  ;;  %vm398_vm15 = vcmp.lt.s32.totalorder %v1136_v49, 16  ;;  %vm361_vm1 = vcmp.lt.s32.totalorder %v1136_v49, 17  ;;  %vm620_vm2 = vcmp.lt.s32.totalorder %v1136_v49, 111 }
 0x2ad   :  { %v251_v50 = vpop.xlane.xlu0 %250 }
 0x2ae   :  { %v257_v51 = vmul.f32 0.001953125, %v251_v50  ;;  %v256_v52 = vpop.xlane.xlu2 %255 }
 0x2af   :  { %v258_v53 = vmul.f32 0.001953125, %v256_v52  ;;  %v1143_v52 = vld [vmem:[%s1625_s7 + $0x8] sm:$0xff] }
 0x2b0   :  { %v261_v54 = vadd.f32 1e-05, %v257_v51 }
 0x2b1   :  { %v262_v55 = vadd.f32 1e-05, %v258_v53  ;;  %v593_v53 = vperm.slane %v1143_v52, 7 }
 0x2b2   :  { %841 = vrsqrt.f32 %v261_v54  ;;  %vm269_vm6 = vweird.f32 %v261_v54 }
 0x2b3   :  { %843 = vrsqrt.f32 %v262_v55  ;;  %vm279_vm8 = vweird.f32 %v262_v55 }
 0x2b8   :  { %v842_v56 = vpop.eup %841 }
 0x2b9   :  { %v844_v57 = vpop.eup %843  ;;  %v264_v58 = vmul.f32 %v842_v56, %v261_v54  ;;  %vm270_vm4 = vweird.f32 %v842_v56 }
 0x2ba   :  { %v274_v59 = vmul.f32 %v844_v57, %v262_v55  ;;  %vm280_vm5 = vweird.f32 %v844_v57  ;;  %vm271_vm7 = vmor %vm269_vm6, %vm270_vm4 }
 0x2bb   :  { %v265_v61 = vmul.f32 %v842_v56, %v264_v58  ;;  %vm281_vm9 = vmor %vm279_vm8, %vm280_vm5 }
 0x2bc   :  { %v275_v62 = vmul.f32 %v844_v57, %v274_v59 }
 0x2bd   :  { %v266_v63 = vmul.f32 0.5, %v265_v61 }
 0x2be   :  { %v276_v0 = vmul.f32 0.5, %v275_v62 }
 0x2bf   :  { %v267_v1 = vsub.f32 1.5, %v266_v63 }
 0x2c0   :  { %v277_v4 = vsub.f32 1.5, %v276_v0 }
 0x2c1   :  { %v268_v6 = vmul.f32 %v842_v56, %v267_v1 }
 0x2c2   :  { %v278_v10 = vmul.f32 %v844_v57, %v277_v4  ;;  %v556_v4 = vperm.slane %v1143_v52, 6 }
 0x2c3   :  { %v272_v2 = vsel %vm271_vm7, %v842_v56, %v268_v6 }
 0x2c4   :  { %v283_v3 = vmul.f32 %v272_v2, %v259_v5  ;;  %v282_v14 = vsel %vm281_vm9, %v844_v57, %v278_v10 }
 0x2c5   :  { %v284_v16 = vmul.f32 %v282_v14, %v260_v7 }
 0x2c6   :  { %293 = vperm.xlu2 %832, %v283_v3   ;;  %v287_v17 = vmul.f32 %v283_v3, %v229_v26 }
 0x2c7   :  { %298 = vperm.xlu1 %833, %v284_v16   ;;  %v288_v21 = vmul.f32 %v284_v16, %v987_v27 }
 0x2c8   :  { %v289_v22 = vsub.f32 %v285_v15, %v287_v17  ;;  %v1197_v15 = vld [vmem:[%s1625_s7] sm:$0xff] }
 0x2c9   :  { %v290_v23 = vsub.f32 %v286_v19, %v288_v21  ;;  %v592_v17 = vperm.slane %v1197_v15, 7 }
 0x2ca   :  { %311 = vperm.xlu0 %834, %v289_v22  }
 0x2ce   :  { %316 = vperm.xlu2 %832, %v290_v23  }
 0x320   :  { %v294_v24 = vpop.permute.xlu2 %293 }
 0x321   :  { %v301_v29 = vmul.f32 %v294_v24, %v967_v12  ;;  %v302_v30 = vmul.f32 %v294_v24, %v969_v13 }
 0x328   :  { %v317_v26 = vpop.permute.xlu2 %316 }
 0x339   :  { %v299_v25 = vpop.permute.xlu1 %298 }
 0x33a   :  { %v306_v28 = vmul.f32 %v299_v25, %v965_v60  ;;  %v307_v35 = vmul.f32 %v299_v25, %v971_v11  ;;  %v303_v60 = vmul.f32 %v294_v24, %v973_v9  ;;  %v305_v9 = vmul.f32 %v299_v25, %v963_v8 }
 0x33b   :  { %v308_v8 = vmul.f32 %v299_v25, %v982_v20  ;;  %v304_v20 = vmul.f32 %v294_v24, %v979_v18 }
 0x33c   :  { %v312_v31 = vpop.permute.xlu0 %311  ;;  %v324_v32 = vadd.f32 %v317_v26, %v306_v28  ;;  %v325_v12 = vadd.f32 %v317_v26, %v307_v35  ;;  %v323_v39 = vadd.f32 %v317_v26, %v305_v9 }
 0x33d   :  { %v319_v33 = vadd.f32 %v312_v31, %v301_v29  ;;  %v320_v34 = vadd.f32 %v312_v31, %v302_v30  ;;  %v321_v13 = vadd.f32 %v312_v31, %v303_v60  ;;  %v326_v41 = vadd.f32 %v317_v26, %v308_v8  ;;  %v1220_v29 = vld [vmem:[%s1625_s7 + $0x10] sm:$0xff]  ;;  %v1225_v30 = vld [vmem:[%s1625_s7 + $0x18] sm:$0xff] }
 0x33e   :  { %v1018_v27 = vmax.f32 %v324_v32, 0.0  ;;  %v1031_v11 = vmax.f32 %v325_v12, 0.0  ;;  %v1048_v40 = vmax.f32 %v323_v39, 0.0  ;;  %v322_v43 = vadd.f32 %v312_v31, %v304_v20 }
 0x33f   :  { %v1020_v36 = vmax.f32 %v319_v33, 0.0  ;;  %v1022_v37 = vmax.f32 %v320_v34, 0.0  ;;  %v1033_v38 = vmax.f32 %v321_v13, 0.0  ;;  %v1063_v42 = vmax.f32 %v326_v41, 0.0 }
 0x340   :  { %573 = vrot.lane.b32.xlu2 %v1018_v27, %s849_s4  ;;  %v1084_v44 = vmax.f32 %v322_v43, 0.0  ;;  %v519_v26 = vperm.slane %v1143_v52, 5  ;;  %v594_v33 = vperm.slane %v1220_v29, 7  ;;  %v595_v34 = vperm.slane %v1225_v30, 7 }
 0x341   :  { %571 = vrot.lane.b32.xlu1 %v1022_v37, %s849_s4  ;;  %567 = vrot.lane.b32.xlu0 %v1020_v36, %s849_s4 }
 0x348   :  { %577 = vrot.lane.b32.xlu2 %v1031_v11, %s849_s4 }
 0x349   :  { %575 = vrot.lane.b32.xlu1 %v1033_v38, %s849_s4  ;;  %499 = vrot.lane.b32.xlu0 %v1018_v27, %s850_s5 }
 0x350   :  { %536 = vrot.lane.b32.xlu2 %v1018_v27, %s851_s22 }
 0x351   :  { %534 = vrot.lane.b32.xlu1 %v1022_v37, %s851_s22  ;;  %530 = vrot.lane.b32.xlu0 %v1020_v36, %s851_s22 }
 0x358   :  { %540 = vrot.lane.b32.xlu2 %v1031_v11, %s851_s22 }
 0x359   :  { %538 = vrot.lane.b32.xlu1 %v1033_v38, %s851_s22  ;;  %495 = vrot.lane.b32.xlu0 %v1048_v40, %s850_s5 }
 0x360   :  { %497 = vrot.lane.b32.xlu2 %v1022_v37, %s850_s5 }
 0x361   :  { %460 = vrot.lane.b32.xlu0 %v1022_v37, %s852_s23  ;;  %569 = vrot.lane.b32.xlu1 %v1048_v40, %s849_s4 }
 0x368   :  { %503 = vrot.lane.b32.xlu2 %v1031_v11, %s850_s5 }
 0x369   :  { %581 = vrot.lane.b32.xlu0 %v1063_v42, %s849_s4  ;;  %501 = vrot.lane.b32.xlu1 %v1033_v38, %s850_s5 }
 0x370   :  { %493 = vrot.lane.b32.xlu2 %v1020_v36, %s850_s5 }
 0x371   :  { %423 = vrot.lane.b32.xlu0 %v1022_v37, %s853_s24  ;;  %532 = vrot.lane.b32.xlu1 %v1048_v40, %s851_s22 }
 0x378   :  { %458 = vrot.lane.b32.xlu2 %v1048_v40, %s852_s23 }
 0x379   :  { %544 = vrot.lane.b32.xlu0 %v1063_v42, %s851_s22  ;;  %456 = vrot.lane.b32.xlu1 %v1020_v36, %s852_s23 }
 0x380   :  { %579 = vrot.lane.b32.xlu2 %v1084_v44, %s849_s4 }
 0x381   :  { %382 = vrot.lane.b32.xlu0 %v1020_v36, %s854_s25  ;;  %462 = vrot.lane.b32.xlu1 %v1018_v27, %s852_s23 }
 0x388   :  { %421 = vrot.lane.b32.xlu2 %v1048_v40, %s853_s24 }
 0x389   :  { %388 = vrot.lane.b32.xlu0 %v1018_v27, %s854_s25  ;;  %419 = vrot.lane.b32.xlu1 %v1020_v36, %s853_s24 }
 0x390   :  { %542 = vrot.lane.b32.xlu2 %v1084_v44, %s851_s22 }
 0x391   :  { %431 = vrot.lane.b32.xlu0 %v1084_v44, %s853_s24  ;;  %425 = vrot.lane.b32.xlu1 %v1018_v27, %s853_s24 }
 0x398   :  { %470 = vrot.lane.b32.xlu2 %v1063_v42, %s852_s23 }
 0x399   :  { %345 = vrot.lane.b32.xlu0 %v1048_v40, %s855_s26  ;;  %468 = vrot.lane.b32.xlu1 %v1084_v44, %s852_s23 }
 0x39a   :  { %v1110_v18 = vpop.permute.xlu2 %573 }
 0x3a0   :  { %386 = vrot.lane.b32.xlu2 %v1022_v37, %s854_s25 }
 0x3a1   :  { %612 = vrot.lane.b32.xlu0 %v1033_v38, %s856_s27  ;;  %384 = vrot.lane.b32.xlu1 %v1048_v40, %s854_s25 }
 0x3a2   :  { %v1118_v45 = vpop.permute.xlu2 %577 }
 0x3a3   :  { %v587_v54 = vsel %vm583_vm10, %v1110_v18, %v1118_v45 }
 0x3a4   :  { %v601_v61 = vmul.f32 %v593_v53, %v587_v54 }
 0x3a8   :  { %507 = vrot.lane.b32.xlu2 %v1063_v42, %s850_s5 }
 0x3a9   :  { %618 = vrot.lane.b32.xlu0 %v1063_v42, %s856_s27  ;;  %505 = vrot.lane.b32.xlu1 %v1084_v44, %s850_s5 }
 0x3aa   :  { %v1126_v46 = vpop.permute.xlu2 %536 }
 0x3b0   :  { %343 = vrot.lane.b32.xlu2 %v1020_v36, %s855_s26 }
 0x3b1   :  { %464 = vrot.lane.b32.xlu0 %v1033_v38, %s852_s23  ;;  %433 = vrot.lane.b32.xlu1 %v1063_v42, %s853_s24 }
 0x3b2   :  { %v1134_v48 = vpop.permute.xlu2 %540 }
 0x3b3   :  { %v572_v50 = vpop.permute.xlu1 %571  ;;  %v1138_v51 = vpop.permute.xlu0 %567  ;;  %v550_v5 = vsel %vm546_vm11, %v1126_v46, %v1134_v48 }
 0x3b4   :  { %v564_v3 = vmul.f32 %v556_v4, %v550_v5  ;;  %v588_v19 = vsel %vm583_vm10, %v1138_v51, %v572_v50 }
 0x3b5   :  { %v596_v25 = vmul.f32 %v592_v17, %v588_v19 }
 0x3b8   :  { %349 = vrot.lane.b32.xlu2 %v1018_v27, %s855_s26 }
 0x3b9   :  { %357 = vrot.lane.b32.xlu0 %v1063_v42, %s855_s26  ;;  %347 = vrot.lane.b32.xlu1 %v1022_v37, %s855_s26 }
 0x3ba   :  { %v1157_v55 = vpop.permute.xlu2 %497 }
 0x3bb   :  { %v576_v56 = vpop.permute.xlu1 %575  ;;  %v1159_v57 = vpop.permute.xlu0 %499 }
 0x3bc   :  { %v586_v58 = vsel %vm583_vm10, %v572_v50, %v576_v56 }
 0x3bd   :  { %v597_v59 = vmul.f32 %v593_v53, %v586_v58 }
 0x3bf   :  { %v671_v62 = vpack.c.bf16 %v601_v61, %v597_v59 }
 0x3c0   :  { %616 = vrot.lane.b32.xlu2 %v1084_v44, %s856_s27 }
 0x3c1   :  { %712 = vmatpush.bf16.msra.mxu2 %v671_v62  ;;  %608 = vrot.lane.b32.xlu0 %v1022_v37, %s856_s27 }
 0x3c2   :  { %614 = vrot.lane.b32.xlu1 %v1031_v11, %s856_s27  ;;  %v1169_v63 = vpop.permute.xlu2 %503 }
 0x3c3   :  { %v535_v0 = vpop.permute.xlu1 %534  ;;  %v1171_v1 = vpop.permute.xlu0 %530  ;;  %v513_v32 = vsel %vm509_vm12, %v1159_v57, %v1169_v63 }
 0x3c4   :  { %v527_v60 = vmul.f32 %v519_v26, %v513_v32  ;;  %v551_v58 = vsel %vm546_vm11, %v1171_v1, %v535_v0 }
 0x3c8   :  { %396 = vrot.lane.b32.xlu2 %v1063_v42, %s854_s25 }
 0x3c9   :  { %429 = vrot.lane.b32.xlu0 %v1031_v11, %s853_s24 }
 0x3ca   :  { %394 = vrot.lane.b32.xlu1 %v1084_v44, %s854_s25  ;;  %v1185_v6 = vpop.permute.xlu2 %493 }
 0x3cb   :  { %v1187_v7 = vpop.permute.xlu1 %538  ;;  %v1189_v10 = vpop.permute.xlu0 %495  ;;  %v514_v5 = vsel %vm509_vm12, %v1185_v6, %v1157_v55 }
 0x3cc   :  { %v549_v2 = vsel %vm546_vm11, %v535_v0, %v1187_v7 }
 0x3cd   :  { %v560_v14 = vmul.f32 %v556_v4, %v549_v2  ;;  %v659_v4 = vpack.c.bf16 %v1018_v27, %v1022_v37 }
 0x3cf   :  { %v667_v16 = vpack.c.bf16 %v564_v3, %v560_v14  ;;  %v518_v3 = vperm.slane %v1197_v15, 5 }
 0x3d0   :  { %355 = vrot.lane.b32.xlu2 %v1084_v44, %s855_s26 }
 0x3d1   :  { %713 = vmatpush.bf16.msra.mxu2 %v667_v16  ;;  %351 = vrot.lane.b32.xlu0 %v1033_v38, %s855_s26  ;;  %v515_v16 = vsel %vm509_vm12, %v1189_v10, %v1159_v57 }
 0x3d2   :  { %466 = vrot.lane.b32.xlu1 %v1031_v11, %s852_s23  ;;  %v1209_v21 = vpop.permute.xlu2 %458 }
 0x3d3   :  { %v1211_v22 = vpop.permute.xlu0 %460  ;;  %v570_v23 = vpop.permute.xlu1 %569 }
 0x3d4   :  { %v589_v24 = vsel %vm583_vm10, %v570_v23, %v1110_v18 }
 0x3d5   :  { %v600_v28 = vmul.f32 %v592_v17, %v589_v24  ;;  %v557_v17 = vperm.slane %v1220_v29, 6 }
 0x3d7   :  { %v670_v31 = vpack.c.bf16 %v600_v28, %v596_v25 }
 0x3d8   :  { %606 = vrot.lane.b32.xlu2 %v1048_v40, %s856_s27 }
 0x3d9   :  { %686 = vmatpush.bf16.msra.mxu0 %v670_v31 }
 0x3da   :  { %604 = vrot.lane.b32.xlu1 %v1020_v36, %s856_s27  ;;  %v580_v35 = vpop.permute.xlu2 %579 }
 0x3db   :  { %v582_v12 = vpop.permute.xlu0 %581  ;;  %v1238_v13 = vpop.permute.xlu1 %501  ;;  %v584_v9 = vsel %vm583_vm10, %v576_v56, %v580_v35  ;;  %v590_v39 = vsel %vm583_vm10, %v580_v35, %v1138_v51  ;;  %v555_v56 = vperm.slane %v1197_v15, 6 }
 0x3dc   :  { %v585_v8 = vsel %vm583_vm10, %v1118_v45, %v582_v12  ;;  %v591_v41 = vsel %vm583_vm10, %v582_v12, %v570_v23  ;;  %v512_v20 = vsel %vm509_vm12, %v1157_v55, %v1238_v13  ;;  %v1254_v43 = vmul.f32 %v594_v33, %v584_v9 }
 0x3dd   :  { %v1256_v18 = vmul.f32 %v594_v33, %v585_v8  ;;  %v1258_v47 = vmul.f32 %v595_v34, %v591_v41  ;;  %v523_v50 = vmul.f32 %v519_v26, %v512_v20  ;;  %v1260_v51 = vmul.f32 %v595_v34, %v590_v39 }
 0x3de   :  { %v559_v2 = vmul.f32 %v555_v56, %v551_v58  ;;  %v526_v55 = vmul.f32 %v518_v3, %v515_v16  ;;  %v445_v58 = vperm.slane %v1143_v52, 2 }
 0x3df   :  { %v663_v53 = vpack.c.bf16 %v527_v60, %v523_v50  ;;  %v673_v45 = vpack.c.bf16 %v1258_v47, %v1260_v51  ;;  %v672_v54 = vpack.c.bf16 %v1256_v18, %v1254_v43  ;;  %v482_v60 = vperm.slane %v1143_v52, 3 }
 0x3e0   :  { %427 = vrot.lane.b32.xlu2 %v1033_v38, %s853_s24  ;;  %v373_v18 = vperm.slane %v1225_v30, 0 }
 0x3e1   :  { %714 = vmatpush.bf16.msra.mxu2 %v663_v53 }
 0x3e2   :  { %610 = vrot.lane.b32.xlu1 %v1018_v27, %s856_s27  ;;  %v1274_v59 = vpop.permute.xlu2 %421  ;;  %v522_v27 = vmul.f32 %v518_v3, %v514_v5 }
 0x3e3   :  { %v1276_v61 = vpop.permute.xlu0 %423  ;;  %v533_v62 = vpop.permute.xlu1 %532 }
 0x3e4   :  { %v552_v0 = vsel %vm546_vm11, %v533_v62, %v1126_v46  ;;  %v558_v46 = vperm.slane %v1225_v30, 6  ;;  %v662_v25 = vpack.c.bf16 %v526_v55, %v522_v27 }
 0x3e5   :  { %v563_v14 = vmul.f32 %v555_v56, %v552_v0  ;;  %715 = vmatpush.bf16.msra.mxu2 %v659_v4 }
 0x3e7   :  { %v666_v37 = vpack.c.bf16 %v563_v14, %v559_v2 }
 0x3e8   :  { %392 = vrot.lane.b32.xlu2 %v1031_v11, %s854_s25 }
 0x3e9   :  { %687 = vmatpush.bf16.msra.mxu0 %v666_v37  ;;  %v481_v37 = vperm.slane %v1197_v15, 3 }
 0x3ea   :  { %390 = vrot.lane.b32.xlu1 %v1033_v38, %s854_s25  ;;  %v543_v19 = vpop.permute.xlu2 %542 }
 0x3eb   :  { %v545_v23 = vpop.permute.xlu0 %544  ;;  %v457_v24 = vpop.permute.xlu1 %456  ;;  %v547_v57 = vsel %vm546_vm11, %v1187_v7, %v543_v19  ;;  %v553_v28 = vsel %vm546_vm11, %v543_v19, %v1171_v1  ;;  %v658_v1 = vpack.c.bf16 %v1048_v40, %v1020_v36 }
 0x3ec   :  { %v548_v26 = vsel %vm546_vm11, %v1134_v48, %v545_v23  ;;  %v554_v31 = vsel %vm546_vm11, %v545_v23, %v533_v62  ;;  %v1309_v32 = vmul.f32 %v557_v17, %v547_v57  ;;  %v1315_v35 = vmul.f32 %v558_v46, %v553_v28 }
 0x3ed   :  { %v1311_v33 = vmul.f32 %v557_v17, %v548_v26  ;;  %v1313_v34 = vmul.f32 %v558_v46, %v554_v31  ;;  %688 = vmatpush.bf16.msra.mxu0 %v662_v25  ;;  %v477_v12 = vsel %vm472_vm13, %v457_v24, %v1211_v22  ;;  %v408_v28 = vperm.slane %v1143_v52, 1 }
 0x3ee   :  { %v486_v8 = vmul.f32 %v482_v60, %v477_v12 }
 0x3ef   :  { %v669_v48 = vpack.c.bf16 %v1313_v34, %v1315_v35  ;;  %v661_v35 = vpack.c.bf16 %v1063_v42, %v1084_v44  ;;  %v836_v42 = vld [vmem:[%s1625_s7 + $0x38] ss:$0 sm:$0xff] }
 0x3f1   :  { %689 = vmatpush.bf16.msra.mxu0 %v658_v1 }
 0x3f2   :  { %353 = vrot.lane.b32.xlu1 %v1031_v11, %s855_s26  ;;  %v1330_v9 = vpop.permute.xlu2 %470 }
 0x3f3   :  { %v1332_v39 = vpop.permute.xlu0 %382  ;;  %v1334_v36 = vpop.permute.xlu1 %462  ;;  %v480_v55 = vsel %vm472_vm13, %v1330_v9, %v1209_v21 }
 0x3f4   :  { %v478_v40 = vsel %vm472_vm13, %v1209_v21, %v1334_v36  ;;  %v489_v23 = vmul.f32 %v481_v37, %v480_v55 }
 0x3f5   :  { %v490_v41 = vmul.f32 %v482_v60, %v478_v40 }
 0x3f7   :  { %v655_v20 = vpack.c.bf16 %v490_v41, %v486_v8  ;;  %v520_v8 = vperm.slane %v1220_v29, 5 }
 0x3f9   :  { %716 = vmatpush.bf16.msra.mxu2 %v655_v20 }
 0x3fa   :  { %v1340_v50 = vpop.permute.xlu2 %386 }
 0x3fb   :  { %v1342_v53 = vpop.permute.xlu0 %388  ;;  %v420_v56 = vpop.permute.xlu1 %419  ;;  %v403_v21 = vsel %vm398_vm15, %v1332_v39, %v1340_v50 }
 0x3fc   :  { %v440_v62 = vsel %vm435_vm14, %v420_v56, %v1276_v61  ;;  %v412_v60 = vmul.f32 %v408_v28, %v403_v21 }
 0x3fd   :  { %v449_v14 = vmul.f32 %v445_v58, %v440_v62 }
 0x402   :  { %v1349_v4 = vpop.permute.xlu2 %507 }
 0x403   :  { %v1351_v5 = vpop.permute.xlu0 %431  ;;  %v1353_v0 = vpop.permute.xlu1 %425  ;;  %v511_v2 = vsel %vm509_vm12, %v1169_v63, %v1349_v4 }
 0x404   :  { %v441_v3 = vsel %vm435_vm14, %v1274_v59, %v1353_v0 }
 0x405   :  { %v453_v16 = vmul.f32 %v445_v58, %v441_v3  ;;  %v1398_v3 = vmul.f32 %v520_v8, %v511_v2 }
 0x407   :  { %v651_v27 = vpack.c.bf16 %v453_v16, %v449_v14  ;;  %v521_v16 = vperm.slane %v1225_v30, 5 }
 0x409   :  { %717 = vmatpush.bf16.msra.mxu2 %v651_v27  ;;  %v444_v27 = vperm.slane %v1197_v15, 2 }
 0x40a   :  { %v1368_v17 = vpop.permute.xlu2 %343 }
 0x40b   :  { %v1370_v46 = vpop.permute.xlu0 %345  ;;  %v1372_v63 = vpop.permute.xlu1 %468 }
 0x40c   :  { %v479_v19 = vsel %vm472_vm13, %v1372_v63, %v457_v24 }
 0x40d   :  { %v485_v25 = vmul.f32 %v481_v37, %v479_v19  ;;  %v442_v37 = vsel %vm435_vm14, %v1351_v5, %v420_v56 }
 0x40e   :  { %v448_v2 = vmul.f32 %v444_v27, %v442_v37 }
 0x40f   :  { %v654_v57 = vpack.c.bf16 %v489_v23, %v485_v25 }
 0x411   :  { %690 = vmatpush.bf16.msra.mxu0 %v654_v57 }
 0x412   :  { %v1383_v26 = vpop.permute.xlu2 %349 }
 0x413   :  { %v1385_v31 = vpop.permute.xlu0 %612  ;;  %v385_v1 = vpop.permute.xlu1 %384  ;;  %v367_v56 = vsel %vm361_vm1, %v1370_v46, %v1383_v26 }
 0x414   :  { %v404_v24 = vsel %vm398_vm15, %v385_v1, %v1342_v53 }
 0x415   :  { %v416_v12 = vmul.f32 %v408_v28, %v404_v24  ;;  %v371_v28 = vperm.slane %v1143_v52, 0 }
 0x417   :  { %v647_v40 = vpack.c.bf16 %v416_v12, %v412_v60  ;;  %v379_v12 = vmul.f32 %v371_v28, %v367_v56 }
 0x419   :  { %718 = vmatpush.bf16.msra.mxu2 %v647_v40 }
 0x41a   :  { %v1391_v41 = vpop.permute.xlu2 %616 }
 0x41b   :  { %v1393_v20 = vpop.permute.xlu0 %618  ;;  %v506_v58 = vpop.permute.xlu1 %505  ;;  %v621_v37 = vsel %vm620_vm2, %v1385_v31, %v1391_v41 }
 0x41c   :  { %v510_v62 = vsel %vm509_vm12, %v1238_v13, %v506_v58 }
 0x41d   :  { %v1400_v14 = vmul.f32 %v520_v8, %v510_v62  ;;  %v1435_v8 = vld.sshfl [vmem:[#allocation1] sm:$0xff pattern:$0x73625140] }
 0x422   :  { %v1408_v55 = vpop.permute.xlu2 %396 }
 0x423   :  { %v1410_v19 = vpop.permute.xlu0 %464  ;;  %v1412_v23 = vpop.permute.xlu1 %433  ;;  %v406_v7 = vsel %vm398_vm15, %v1408_v55, %v385_v1 }
 0x424   :  { %v443_v13 = vsel %vm435_vm14, %v1412_v23, %v1274_v59 }
 0x425   :  { %v452_v25 = vmul.f32 %v444_v27, %v443_v13  ;;  %v837_v27 = vld [vmem:[%s1625_s7 + $0x30] ss:$0 sm:$0xff] }
 0x427   :  { %v650_v57 = vpack.c.bf16 %v452_v25, %v448_v2 }
 0x429   :  { %691 = vmatpush.bf16.msra.mxu0 %v650_v57  ;;  %v635_v57 = vmul.f32 %v837_v27, %v621_v37 }
 0x42a   :  { %v1424_v21 = vpop.permute.xlu2 %355 }
 0x42b   :  { %v1426_v24 = vpop.permute.xlu0 %357  ;;  %v1428_v60 = vpop.permute.xlu1 %347 }
 0x42c   :  { %v366_v59 = vsel %vm361_vm1, %v1368_v17, %v1428_v60 }
 0x42d   :  { %v375_v40 = vmul.f32 %v371_v28, %v366_v59  ;;  %v446_v59 = vperm.slane %v1220_v29, 2 }
 0x42f   :  { %v643_v52 = vpack.c.bf16 %v379_v12, %v375_v40  ;;  %v516_v12 = vsel %vm509_vm12, %v506_v58, %v1185_v6  ;;  %v407_v40 = vperm.slane %v1197_v15, 1  ;;  %v1470_v6 = vld.sshfl [vmem:[#allocation1 + $0x8] sm:$0xff pattern:$0x73625140]  ;;  %v517_v58 = vsel %vm509_vm12, %v1349_v4, %v1189_v10 }
 0x430   :  { %v525_v51 = vmul.f32 %v521_v16, %v516_v12 }
 0x431   :  { %719 = vmatpush.bf16.msra.mxu2 %v643_v52  ;;  %v415_v4 = vmul.f32 %v407_v40, %v406_v7  ;;  %v484_v7 = vperm.slane %v1225_v30, 3 }
 0x432   :  { %v1437_v62 = vpop.permute.xlu2 %606 }
 0x433   :  { %v1446_v13 = vpop.permute.xlu0 %608  ;;  %v628_v44 = vsel %vm620_vm2, %v1393_v20, %v1437_v62 }
 0x434   :  { %v1448_v2 = vpop.permute.xlu1 %614  ;;  %720 = vmatmul.bf16.vlgmr.msra.gmra.mxu2 %v1435_v8 }
 0x435   :  { %v622_v25 = vsel %vm620_vm2, %v1448_v2, %v1393_v20  ;;  %v838_v20 = vld [vmem:[%s1625_s7 + $0x20] ss:$0 sm:$0xff] }
 0x436   :  { %v639_v28 = vmul.f32 %v837_v27, %v622_v25 }
 0x438   :  { %v676_v56 = vpack.c.bf16 %v639_v28, %v635_v57  ;;  %v529_v28 = vmul.f32 %v521_v16, %v517_v58  ;;  %v473_v16 = vsel %vm472_vm13, %v1410_v19, %v1372_v63 }
 0x43a   :  { %758 = vmatpush.bf16.msra.mxu3 %v676_v56  ;;  %v428_v52 = vpop.permute.xlu2 %427  ;;  %v665_v12 = vpack.c.bf16 %v529_v28, %v525_v51 }
 0x43b   :  { %v430_v27 = vpop.permute.xlu0 %429  ;;  %v438_v37 = vsel %vm435_vm14, %v1276_v61, %v428_v52 }
 0x43c   :  { %v439_v1 = vsel %vm435_vm14, %v1353_v0, %v430_v27  ;;  %v1479_v25 = vpop.permute.xlu1 %394  ;;  %v1481_v47 = vmul.f32 %v446_v59, %v438_v37  ;;  %v370_v0 = vperm.slane %v1197_v15, 0  ;;  %v436_v37 = vsel %vm435_vm14, %v428_v52, %v1351_v5 }
 0x43d   :  { %v1487_v61 = vmul.f32 %v446_v59, %v439_v1  ;;  %v405_v10 = vsel %vm398_vm15, %v1479_v25, %v1332_v39  ;;  %809 = vmatmul.msk.bf16.vlgmr.msra.gmra.mxu3 %vm683_vm3, %v1470_v6  ;;  %v447_v1 = vperm.slane %v1225_v30, 2  ;;  %v437_v63 = vsel %vm435_vm14, %v430_v27, %v1412_v23 }
 0x43e   :  { %764 = vmatpush.bf16.msrb.mxu3 %v673_v45  ;;  %v368_v45 = vsel %vm361_vm1, %v1424_v21, %v1368_v17  ;;  %v411_v57 = vmul.f32 %v407_v40, %v405_v10  ;;  %v369_v17 = vsel %vm361_vm1, %v1426_v24, %v1370_v46  ;;  %v640_v27 = vmul.f32 %v836_v42, %v628_v44 }
 0x43f   :  { %v652_v39 = vpack.c.bf16 %v1487_v61, %v1481_v47  ;;  %v374_v56 = vmul.f32 %v370_v0, %v368_v45  ;;  %v378_v15 = vmul.f32 %v370_v0, %v369_v17  ;;  %v451_v45 = vmul.f32 %v447_v1, %v436_v37  ;;  %v835_v0 = vld [vmem:[%s1625_s7 + $0x28] ss:$0 sm:$0xff] }
 0x440   :  { %v646_v59 = vpack.c.bf16 %v415_v4, %v411_v57  ;;  %v623_v57 = vsel %vm620_vm2, %v1446_v13, %v1385_v31 }
 0x441   :  { %v642_v40 = vpack.c.bf16 %v378_v15, %v374_v56 }
 0x442   :  { %765 = vmatpush.bf16.msrb.mxu3 %v669_v48  ;;  %692 = vmatpush.bf16.msra.mxu0 %v646_v59  ;;  %v488_v48 = vmul.f32 %v484_v7, %v473_v16  ;;  %v634_v59 = vmul.f32 %v835_v0, %v623_v57  ;;  %v393_v16 = vpop.permute.xlu2 %392 }
 0x443   :  { %v352_v37 = vpop.permute.xlu0 %351 }
 0x444   :  { %v467_v46 = vpop.permute.xlu1 %466 }
 0x445   :  { %v474_v34 = vsel %vm472_vm13, %v467_v46, %v1330_v9  ;;  %v455_v9 = vmul.f32 %v447_v1, %v437_v63 }
 0x446   :  { %766 = vmatpush.bf16.msrb.mxu3 %v665_v12  ;;  %v492_v58 = vmul.f32 %v484_v7, %v474_v34  ;;  %693 = vmatpush.bf16.msra.mxu0 %v642_v40 }
 0x447   :  { %v653_v52 = vpack.c.bf16 %v455_v9, %v451_v45 }
 0x448   :  { %v657_v51 = vpack.c.bf16 %v492_v58, %v488_v48  ;;  %v1628_v58 = vpack.c.bf16 %v1398_v3, %v1400_v14 }
 0x449   :  { %694 = vmatmul.bf16.vlgmr.msra.gmra.mxu0 %v1435_v8 }
 0x44a   :  { %767 = vmatpush.bf16.msrb.mxu3 %v661_v35 }
 0x44c   :  { %v605_v5 = vpop.permute.xlu1 %604 }
 0x44d   :  { %v627_v23 = vsel %vm620_vm2, %v1391_v41, %v605_v5  ;;  %v625_v41 = vsel %vm620_vm2, %v605_v5, %v1446_v13  ;;  %v410_v13 = vperm.slane %v1225_v30, 1  ;;  %v475_v30 = vsel %vm472_vm13, %v1211_v22, %v1410_v19 }
 0x44e   :  { %768 = vmatpush.bf16.msrb.mxu3 %v657_v51  ;;  %v636_v10 = vmul.f32 %v836_v42, %v627_v23  ;;  %v633_v7 = vmul.f32 %v838_v20, %v625_v41  ;;  %v409_v22 = vperm.slane %v1220_v29, 1  ;;  %v402_v19 = vsel %vm398_vm15, %v1342_v53, %v393_v16 }
 0x450   :  { %v677_v4 = vpack.c.bf16 %v640_v27, %v636_v10  ;;  %v417_v45 = vmul.f32 %v409_v22, %v402_v19 }
 0x452   :  { %769 = vmatpush.bf16.msrb.mxu3 %v653_v52  ;;  %784 = vmatpush.bf16.msrb.mxu0 %v677_v4 }
 0x454   :  { %v611_v28 = vpop.permute.xlu1 %610 }
 0x455   :  { %v624_v17 = vsel %vm620_vm2, %v611_v28, %v1448_v2  ;;  %v626_v56 = vsel %vm620_vm2, %v1437_v62, %v611_v28  ;;  %v400_v2 = vsel %vm398_vm15, %v393_v16, %v1408_v55  ;;  %v1627_v55 = vpack.c.bf16 %v1311_v33, %v1309_v32 }
 0x456   :  { %v638_v12 = vmul.f32 %v835_v0, %v624_v17  ;;  %v637_v15 = vmul.f32 %v838_v20, %v626_v56  ;;  %v418_v35 = vmul.f32 %v410_v13, %v400_v2 }
 0x458   :  { %v674_v40 = vpack.c.bf16 %v637_v15, %v633_v7  ;;  %v675_v31 = vpack.c.bf16 %v638_v12, %v634_v59 }
 0x459   :  { %810 = vmatmul.msk.bf16.vlgmr.msrb.gmra.mxu0 %vm683_vm3, %v1470_v6 }
 0x45a   :  { %706 = vmatpush.bf16.msra.mxu1 %v674_v40  ;;  %732 = vmatpush.bf16.msrb.mxu2 %v675_v31 }
 0x45c   :  { %v391_v62 = vpop.permute.xlu1 %390 }
 0x45d   :  { %v399_v34 = vsel %vm398_vm15, %v391_v62, %v1479_v25  ;;  %807 = vmatmul.msk.bf16.vlgmr.msra.gmra.mxu1 %vm683_vm3, %v1470_v6  ;;  %808 = vmatmul.msk.bf16.vlgmr.msrb.gmra.mxu2 %vm683_vm3, %v1470_v6  ;;  %v483_v25 = vperm.slane %v1220_v29, 3  ;;  %v362_v6 = vsel %vm361_vm1, %v352_v37, %v1424_v21  ;;  %v401_v51 = vsel %vm398_vm15, %v1340_v50, %v391_v62 }
 0x45e   :  { %738 = vmatpush.bf16.msrb.mxu1 %v672_v54  ;;  %v414_v48 = vmul.f32 %v410_v13, %v399_v34  ;;  %v476_v54 = vsel %vm472_vm13, %v1334_v36, %v467_v46  ;;  %v660_v46 = vpack.c.bf16 %v1031_v11, %v1033_v38  ;;  %v377_v1 = vmul.f32 %v373_v18, %v362_v6 }
 0x45f   :  { %v491_v33 = vmul.f32 %v483_v25, %v476_v54  ;;  %v487_v63 = vmul.f32 %v483_v25, %v475_v30  ;;  %v372_v38 = vperm.slane %v1220_v29, 0  ;;  %v364_v50 = vsel %vm361_vm1, %v1428_v60, %v352_v37 }
 0x460   :  { %v649_v43 = vpack.c.bf16 %v418_v35, %v414_v48 }
 0x461   :  { %v656_v14 = vpack.c.bf16 %v491_v33, %v487_v63  ;;  %v376_v44 = vmul.f32 %v372_v38, %v364_v50 }
 0x462   :  { %739 = vmatpush.bf16.msrb.mxu1 %v1627_v55  ;;  %770 = vmatpush.bf16.msrb.mxu3 %v649_v43 }
 0x464   :  { %v354_v32 = vpop.permute.xlu1 %353 }
 0x465   :  { %v363_v36 = vsel %vm361_vm1, %v354_v32, %v1426_v24  ;;  %v413_v24 = vmul.f32 %v409_v22, %v401_v51  ;;  %v365_v11 = vsel %vm361_vm1, %v1383_v26, %v354_v32 }
 0x466   :  { %740 = vmatpush.bf16.msrb.mxu1 %v1628_v58  ;;  %v381_v21 = vmul.f32 %v373_v18, %v363_v36  ;;  %v380_v42 = vmul.f32 %v372_v38, %v365_v11 }
 0x467   :  { %v648_v53 = vpack.c.bf16 %v417_v45, %v413_v24 }
 0x468   :  { %v645_v3 = vpack.c.bf16 %v381_v21, %v377_v1  ;;  %v644_v9 = vpack.c.bf16 %v380_v42, %v376_v44 }
 0x46a   :  { %741 = vmatpush.bf16.msrb.mxu1 %v660_v46  ;;  %771 = vmatpush.bf16.msrb.mxu3 %v645_v3 }
 0x46d   :  { %772 = vmatmul.bf16.vlgmr.msrb.gmra.mxu3 %v1435_v8 }
 0x46e   :  { %742 = vmatpush.bf16.msrb.mxu1 %v656_v14 }
 0x472   :  { %743 = vmatpush.bf16.msrb.mxu1 %v652_v39 }
 0x476   :  { %744 = vmatpush.bf16.msrb.mxu1 %v648_v53 }
 0x47a   :  { %745 = vmatpush.bf16.msrb.mxu1 %v644_v9 }
 0x47d   :  { %746 = vmatmul.bf16.vlgmr.msrb.gmra.mxu1 %v1435_v8 }
 0x4b7   :  { %v721_v26 = vpop.f32.mrf.mxu2 }
 0x4bf   :  { %v723_v5 = vpop.f32.mrf.mxu2 }
 0x4c0   :  { %v760_v29 = vpop.f32.mrf.mxu3 }
 0x4c6   :  { %v695_v23 = vpop.f32.mrf.mxu0 }
 0x4c8   :  { %v762_v52 = vpop.f32.mrf.mxu3 }
 0x4ce   :  { %v697_v27 = vpop.f32.mrf.mxu0 }
 0x4d6   :  { %v786_v47 = vpop.f32.mrf.mxu0 }
 0x4da   :  { %v708_v61 = vpop.f32.mrf.mxu1 }
 0x4db   :  { %v709_v49 = vadd.f32 %v708_v61, %v695_v23 }
 0x4de   :  { %v788_v39 = vpop.f32.mrf.mxu0 }
 0x4e0   :  { %v734_v10 = vpop.f32.mrf.mxu2 }
 0x4e1   :  { %v735_v60 = vadd.f32 %v734_v10, %v721_v26 }
 0x4e2   :  { %v710_v4 = vpop.f32.mrf.mxu1 }
 0x4e3   :  { %v792_v0 = vrot.slane %v735_v60, 4 }
 0x4e5   :  { %v793_v20 = vsel %vm44_vm0, %v709_v49, %v792_v0 }
 0x4e6   :  { %795 = vst [vmem:[%s1626_s8] sm:$0xff] %v793_v20 }
 0x4e8   :  { %v736_v8 = vpop.f32.mrf.mxu2 }
 0x4f0   :  { %v773_v57 = vpop.f32.mrf.mxu3 }
 0x4f1   :  { %v787_v41 = vadd.f32 %v786_v47, %v773_v57 }
 0x4f3   :  { %v798_v28 = vrot.slane %v787_v41, 4 }
 0x4f8   :  { %v775_v59 = vpop.f32.mrf.mxu3 }
 0x4fa   :  { %v747_v17 = vpop.f32.mrf.mxu1 }
 0x4fb   :  { %v761_v56 = vadd.f32 %v760_v29, %v747_v17 }
 0x4fd   :  { %v799_v12 = vsel %vm44_vm0, %v761_v56, %v798_v28 }
 0x4fe   :  { %811 = vst [vmem:[%s1626_s8 + $0x8] sm:$0xff] %v799_v12 }
 0x502   :  { %v749_v7 = vpop.f32.mrf.mxu1 }

</bundles_post_ra>
